<compile_context>
chip_gen: v6e
topology: v6e:2x2x1
jax: 0.10.0
libtpu: 0.0.40
codegen_flags: <defaults>
</compile_context>

<pallas_src>
import functools

import numpy as np
import jax
import jax.numpy as jnp
from jax import lax
from jax.experimental import pallas as pl
from jax.experimental.pallas import tpu as pltpu


def _round_up(x, m):
    return -(-x // m) * m


def pack_params(params):
    """Pack all flow weights into one contiguous (rows, C) f32 buffer.

    Each piece starts at a row offset that is a multiple of 8 (sublane aligned)
    and at lane 0, so in-kernel sub-views need no sublane/lane shifts.
    Returns (packed_array, layout) where layout holds the static offsets.
    """
    n_flows, dim_z, dim_hidden = params["w1"].shape
    n_hidden = params["wh"].shape[1]
    C = max(dim_hidden, dim_z)

    pieces = []
    offsets = {}
    row = 0

    def add(name, arr2d):
        nonlocal row
        r, c = arr2d.shape
        r_pad = _round_up(r, 8)
        buf = jnp.zeros((r_pad, C), jnp.float32)
        buf = buf.at[:r, :c].set(arr2d.astype(jnp.float32))
        pieces.append(buf)
        offsets[name] = row
        row += r_pad

    for f in range(n_flows):
        add(("w1", f), params["w1"][f])                  # (dim_z, dim_hidden)
        add(("b1", f), params["b1"][f])                  # (1, dim_hidden)
        for j in range(n_hidden):
            add(("wh", f, j), params["wh"][f, j])        # (dim_hidden, dim_hidden)
            add(("bh", f, j), params["bh"][f, j])        # (1, dim_hidden)
        add(("wmu", f), params["wmu"][f])                # (dim_hidden, dim_z)
        add(("bmu", f), params["bmu"][f])                # (1, dim_z)
        add(("wsig", f), params["wsig"][f])              # (dim_hidden, dim_z)
        add(("bsig", f), params["bsig"][f])              # (1, dim_z)

    packed = jnp.concatenate(pieces, axis=0)
    layout = dict(offsets=offsets, n_flows=n_flows, n_hidden=n_hidden,
                  dim_z=dim_z, dim_hidden=dim_hidden, cols=C,
                  rows=int(packed.shape[0]))
    return packed, layout


def _rnvp_kernel(layout, p_ref, mask_ref, z_ref, out_ref):
    """Whole RNVP stack in one invocation (flows statically unrolled)."""
    dim_z = layout["dim_z"]
    dim_hidden = layout["dim_hidden"]
    n_flows = layout["n_flows"]
    n_hidden = layout["n_hidden"]
    off = layout["offsets"]

    def piece(name, rows, cols):
        r0 = off[name]                                   # static Python int
        return p_ref[r0:r0 + rows, 0:cols]

    z = z_ref[...]                                       # (B, dim_z)
    log_det = jnp.zeros_like(z)                          # (B, dim_z)
    ones_bz = jnp.ones_like(z)                           # hoisted broadcast

    for f in range(n_flows):                             # static unroll over flows
        mask = mask_ref[f]                               # (B, dim_z)
        one_minus_mask = 1.0 - mask                      # hoisted (used twice)
        z_masked = mask * z

        # f: Linear(dim_z, dim_hidden) -> n_hidden * [ReLU, Linear] -> ReLU
        h = jnp.dot(z_masked, piece(("w1", f), dim_z, dim_hidden),
                    preferred_element_type=jnp.float32)
        h = h + piece(("b1", f), 1, dim_hidden)
        for j in range(n_hidden):                        # static unroll (tiny)
            h = jnp.maximum(h, 0.0)
            h = jnp.dot(h, piece(("wh", f, j), dim_hidden, dim_hidden),
                        preferred_element_type=jnp.float32)
            h = h + piece(("bh", f, j), 1, dim_hidden)
        h = jnp.maximum(h, 0.0)

        # Separate mu / sigma heads (dim_z < 128: avoids a lane-offset extract
        # on the critical path; two small matmuls pipeline on the MXU).
        mu = jnp.dot(h, piece(("wmu", f), dim_hidden, dim_z),
                     preferred_element_type=jnp.float32)
        mu = mu + piece(("bmu", f), 1, dim_z)
        s_logit = jnp.dot(h, piece(("wsig", f), dim_hidden, dim_z),
                          preferred_element_type=jnp.float32)
        s_logit = s_logit + piece(("bsig", f), 1, dim_z)

        # Stable log-sigmoid from the logits: log(sigma) = -softplus(-x).
        log_sigma = -(jnp.maximum(-s_logit, 0.0)
                      + jnp.log1p(jnp.exp(-jnp.abs(s_logit))))
        sigma = jnp.exp(log_sigma)                       # == sigmoid(s_logit)

        # Coupling update.
        z = z_masked + one_minus_mask * (z * sigma + (1.0 - sigma) * mu)

        # torch: log_det += (1 - mask) * sigma.log().sum(dim=1)
        # The (B,) sum broadcasts against the LAST axis of (1 - mask) (valid
        # when dim_z == B).  Computed on the MXU as ones @ log_sigma^T:
        # row_sums[i, j] = sum_k log_sigma[j, k].
        row_sums = lax.dot_general(ones_bz, log_sigma,
                                   (((1,), (1,)), ((), ())),
                                   preferred_element_type=jnp.float32)
        log_det = log_det + one_minus_mask * row_sums

    # Single lane-denser output slab [z | log_det]: one HBM writeback, written
    # with two direct sub-stores (no concat/lane-shuffle in the epilogue).
    out_ref[:, :dim_z] = z
    out_ref[:, dim_z:] = log_det


def rnvp_flow(z, masks, packed, layout):
    B, dim_z = z.shape
    assert dim_z == layout["dim_z"]
    # The original torch module's log_det broadcast only type-checks when
    # B == dim_z; we reproduce that exact behavior.
    assert B == dim_z, "torch log_det broadcast requires B == dim_z"
    n_flows = layout["n_flows"]
    R, C = packed.shape

    kernel = functools.partial(_rnvp_kernel, layout)

    # Single grid step: all blocks are full arrays (exempt from the (8,128)
    # divisibility rule), everything resident in VMEM (~tens of KiB here).
    grid_spec = pltpu.PrefetchScalarGridSpec(
        num_scalar_prefetch=0,
        grid=(1,),
        in_specs=[
            pl.BlockSpec((R, C), lambda i: (0, 0)),                   # packed weights
            pl.BlockSpec((n_flows, B, dim_z), lambda i: (0, 0, 0)),   # masks
            pl.BlockSpec((B, dim_z), lambda i: (0, 0)),               # z
        ],
        out_specs=pl.BlockSpec((B, 2 * dim_z), lambda i: (0, 0)),     # [z | log_det]
    )

    out = pl.pallas_call(
        kernel,
        out_shape=jax.ShapeDtypeStruct((B, 2 * dim_z), jnp.float32),
        grid_spec=grid_spec,
        compiler_params=pltpu.CompilerParams(
            dimension_semantics=("arbitrary",)),
    )(packed, masks, z)

    return out[:, :dim_z], out[:, dim_z:]


def init_params(key, dim_z, n_flows, n_hidden, dim_hidden):
    """Deterministic Linear-style init (uniform +-1/sqrt(fan_in)), stacked over flows."""
    def linear(k, fan_in, fan_out):
        kw, kb = jax.random.split(k)
        bound = 1.0 / np.sqrt(fan_in)
        w = jax.random.uniform(kw, (fan_in, fan_out), jnp.float32, -bound, bound)
        b = jax.random.uniform(kb, (1, fan_out), jnp.float32, -bound, bound)
        return w, b

    w1, b1, wh, bh, wmu, bmu, wsig, bsig = [], [], [], [], [], [], [], []
    for _ in range(n_flows):
        key, k0, kmu, ksig = jax.random.split(key, 4)
        w, b = linear(k0, dim_z, dim_hidden)
        w1.append(w); b1.append(b)
        whs, bhs = [], []
        for _ in range(n_hidden):
            key, kh = jax.random.split(key)
            w, b = linear(kh, dim_hidden, dim_hidden)
            whs.append(w); bhs.append(b)
        wh.append(jnp.stack(whs)); bh.append(jnp.stack(bhs))
        w, b = linear(kmu, dim_hidden, dim_z)
        wmu.append(w); bmu.append(b)
        w, b = linear(ksig, dim_hidden, dim_z)
        wsig.append(w); bsig.append(b)

    return {
        "w1": jnp.stack(w1),     # (n_flows, dim_z, dim_hidden)
        "b1": jnp.stack(b1),     # (n_flows, 1, dim_hidden)
        "wh": jnp.stack(wh),     # (n_flows, n_hidden, dim_hidden, dim_hidden)
        "bh": jnp.stack(bh),     # (n_flows, n_hidden, 1, dim_hidden)
        "wmu": jnp.stack(wmu),   # (n_flows, dim_hidden, dim_z)
        "bmu": jnp.stack(bmu),   # (n_flows, 1, dim_z)
        "wsig": jnp.stack(wsig), # (n_flows, dim_hidden, dim_z)
        "bsig": jnp.stack(bsig), # (n_flows, 1, dim_z)
    }


def rnvp_ref(z, masks, p):
    """Pure-JAX reference mirroring the torch forward exactly."""
    log_det = jnp.zeros_like(z)
    n_flows = masks.shape[0]
    n_hidden = p["wh"].shape[1]
    for i in range(n_flows):
        mask = masks[i]
        z_masked = mask * z
        h = z_masked @ p["w1"][i] + p["b1"][i]
        for j in range(n_hidden):
            h = jax.nn.relu(h)
            h = h @ p["wh"][i, j] + p["bh"][i, j]
        h = jax.nn.relu(h)
        mu = h @ p["wmu"][i] + p["bmu"][i]
        sigma = jax.nn.sigmoid(h @ p["wsig"][i] + p["bsig"][i])
        z = z_masked + (1 - mask) * (z * sigma + (1 - sigma) * mu)
        # same (last-axis) broadcast as torch
        log_det = log_det + (1 - mask) * jnp.sum(jnp.log(sigma), axis=1)
    return z, log_det


if __name__ == "__main__":
    # Small shapes. B == dim_z is required by the original module's log_det broadcast.
    B, dim_z, n_flows, n_hidden, dim_hidden = 8, 8, 3, 2, 32

    key = jax.random.PRNGKey(0)
    kz, kmask, kparam = jax.random.split(key, 3)

    z = jax.random.normal(kz, (B, dim_z), jnp.float32)
    # TODO(synk): torch samples bernoulli masks per forward call; here masks are
    # precomputed deterministically and passed in.
    masks = jax.random.bernoulli(kmask, 0.5, (n_flows, B, dim_z)).astype(jnp.float32)
    params = init_params(kparam, dim_z, n_flows, n_hidden, dim_hidden)

    packed, layout = pack_params(params)       # one-time weight packing
    jax.block_until_ready(packed)

    z_out, log_det = rnvp_flow(z, masks, packed, layout)
    jax.block_until_ready((z_out, log_det))

    z_ref, ld_ref = rnvp_ref(z, masks, params)
    np.testing.assert_allclose(np.asarray(z_out), np.asarray(z_ref),
                               rtol=1e-3, atol=1e-3)
    np.testing.assert_allclose(np.asarray(log_det), np.asarray(ld_ref),
                               rtol=1e-3, atol=1e-3)

    print("KERNEL_OK")
</pallas_src>

<mosaic_0001>
module attributes {stable_mosaic.version = 11 : i64} {
  func.func @_rnvp_kernel(%arg0: i32, %arg1: memref<528x32xf32, #tpu.memory_space<vmem>>, %arg2: memref<3x8x8xf32, #tpu.memory_space<vmem>>, %arg3: memref<8x8xf32, #tpu.memory_space<vmem>>, %arg4: memref<8x16xf32, #tpu.memory_space<vmem>>) attributes {dimension_semantics = [#tpu.dimension_semantics<arbitrary>], iteration_bounds = array<i64: 1>, scalar_prefetch = 0 : i64, scratch_operands = 0 : i64, tpu.core_type = #tpu.core_type<tc>, window_params = [{pipeline_mode = #tpu.pipeline_mode<synchronous>, transform_indices = @transform_0, window_bounds = array<i64: 528, 32>}, {pipeline_mode = #tpu.pipeline_mode<synchronous>, transform_indices = @transform_1, window_bounds = array<i64: 3, 8, 8>}, {pipeline_mode = #tpu.pipeline_mode<synchronous>, transform_indices = @transform_2, window_bounds = array<i64: 8, 8>}, {pipeline_mode = #tpu.pipeline_mode<synchronous>, transform_indices = @transform_3, window_bounds = array<i64: 8, 16>}]} {
    %c0 = arith.constant 0 : index
    %c0_0 = arith.constant 0 : index
    %0 = vector.load %arg3[%c0, %c0_0] : memref<8x8xf32, #tpu.memory_space<vmem>>, vector<8x8xf32>
    %cst = arith.constant 0.000000e+00 : f32
    %1 = vector.broadcast %cst : f32 to vector<8x8xf32>
    %cst_1 = arith.constant 1.000000e+00 : f32
    %2 = vector.broadcast %cst_1 : f32 to vector<8x8xf32>
    %c0_2 = arith.constant 0 : index
    %c0_3 = arith.constant 0 : index
    %c0_4 = arith.constant 0 : index
    %3 = vector.load %arg2[%c0_2, %c0_3, %c0_4] : memref<3x8x8xf32, #tpu.memory_space<vmem>>, vector<1x8x8xf32>
    %4 = vector.shape_cast %3 : vector<1x8x8xf32> to vector<8x8xf32>
    %cst_5 = arith.constant 1.000000e+00 : f32
    %5 = vector.broadcast %cst_5 : f32 to vector<8x8xf32>
    %6 = arith.subf %5, %4 : vector<8x8xf32>
    %7 = arith.mulf %4, %0 : vector<8x8xf32>
    %c0_6 = arith.constant 0 : index
    %c0_7 = arith.constant 0 : index
    %8 = vector.load %arg1[%c0_6, %c0_7] : memref<528x32xf32, #tpu.memory_space<vmem>>, vector<8x32xf32>
    %cst_8 = arith.constant dense<0.000000e+00> : vector<8x32xf32>
    %9 = tpu.matmul %7, %8, %cst_8 {dimension_numbers = #tpu.dot_dimension_numbers<[1], [0], [0], [1], [0, 0, 1, 1], [], []>} : vector<8x8xf32>, vector<8x32xf32>, vector<8x32xf32> -> vector<8x32xf32>
    %c8 = arith.constant 8 : index
    %c0_9 = arith.constant 0 : index
    %10 = vector.load %arg1[%c8, %c0_9] : memref<528x32xf32, #tpu.memory_space<vmem>>, vector<1x32xf32>
    %11 = vector.broadcast %10 : vector<1x32xf32> to vector<8x32xf32>
    %12 = arith.addf %9, %11 : vector<8x32xf32>
    %cst_10 = arith.constant 0.000000e+00 : f32
    %13 = vector.broadcast %cst_10 : f32 to vector<8x32xf32>
    %14 = arith.maximumf %12, %13 : vector<8x32xf32>
    %c16 = arith.constant 16 : index
    %c0_11 = arith.constant 0 : index
    %15 = vector.load %arg1[%c16, %c0_11] : memref<528x32xf32, #tpu.memory_space<vmem>>, vector<32x32xf32>
    %cst_12 = arith.constant dense<0.000000e+00> : vector<8x32xf32>
    %16 = tpu.matmul %14, %15, %cst_12 {dimension_numbers = #tpu.dot_dimension_numbers<[1], [0], [0], [1], [0, 0, 1, 1], [], []>} : vector<8x32xf32>, vector<32x32xf32>, vector<8x32xf32> -> vector<8x32xf32>
    %c48 = arith.constant 48 : index
    %c0_13 = arith.constant 0 : index
    %17 = vector.load %arg1[%c48, %c0_13] : memref<528x32xf32, #tpu.memory_space<vmem>>, vector<1x32xf32>
    %18 = vector.broadcast %17 : vector<1x32xf32> to vector<8x32xf32>
    %19 = arith.addf %16, %18 : vector<8x32xf32>
    %cst_14 = arith.constant 0.000000e+00 : f32
    %20 = vector.broadcast %cst_14 : f32 to vector<8x32xf32>
    %21 = arith.maximumf %19, %20 : vector<8x32xf32>
    %c56 = arith.constant 56 : index
    %c0_15 = arith.constant 0 : index
    %22 = vector.load %arg1[%c56, %c0_15] : memref<528x32xf32, #tpu.memory_space<vmem>>, vector<32x32xf32>
    %cst_16 = arith.constant dense<0.000000e+00> : vector<8x32xf32>
    %23 = tpu.matmul %21, %22, %cst_16 {dimension_numbers = #tpu.dot_dimension_numbers<[1], [0], [0], [1], [0, 0, 1, 1], [], []>} : vector<8x32xf32>, vector<32x32xf32>, vector<8x32xf32> -> vector<8x32xf32>
    %c88 = arith.constant 88 : index
    %c0_17 = arith.constant 0 : index
    %24 = vector.load %arg1[%c88, %c0_17] : memref<528x32xf32, #tpu.memory_space<vmem>>, vector<1x32xf32>
    %25 = vector.broadcast %24 : vector<1x32xf32> to vector<8x32xf32>
    %26 = arith.addf %23, %25 : vector<8x32xf32>
    %cst_18 = arith.constant 0.000000e+00 : f32
    %27 = vector.broadcast %cst_18 : f32 to vector<8x32xf32>
    %28 = arith.maximumf %26, %27 : vector<8x32xf32>
    %c96 = arith.constant 96 : index
    %c0_19 = arith.constant 0 : index
    %29 = vector.load %arg1[%c96, %c0_19] : memref<528x32xf32, #tpu.memory_space<vmem>>, vector<32x8xf32>
    %cst_20 = arith.constant dense<0.000000e+00> : vector<8x8xf32>
    %30 = tpu.matmul %28, %29, %cst_20 {dimension_numbers = #tpu.dot_dimension_numbers<[1], [0], [0], [1], [0, 0, 1, 1], [], []>} : vector<8x32xf32>, vector<32x8xf32>, vector<8x8xf32> -> vector<8x8xf32>
    %c128 = arith.constant 128 : index
    %c0_21 = arith.constant 0 : index
    %31 = vector.load %arg1[%c128, %c0_21] : memref<528x32xf32, #tpu.memory_space<vmem>>, vector<1x8xf32>
    %32 = vector.broadcast %31 : vector<1x8xf32> to vector<8x8xf32>
    %33 = arith.addf %30, %32 : vector<8x8xf32>
    %c136 = arith.constant 136 : index
    %c0_22 = arith.constant 0 : index
    %34 = vector.load %arg1[%c136, %c0_22] : memref<528x32xf32, #tpu.memory_space<vmem>>, vector<32x8xf32>
    %cst_23 = arith.constant dense<0.000000e+00> : vector<8x8xf32>
    %35 = tpu.matmul %28, %34, %cst_23 {dimension_numbers = #tpu.dot_dimension_numbers<[1], [0], [0], [1], [0, 0, 1, 1], [], []>} : vector<8x32xf32>, vector<32x8xf32>, vector<8x8xf32> -> vector<8x8xf32>
    %c168 = arith.constant 168 : index
    %c0_24 = arith.constant 0 : index
    %36 = vector.load %arg1[%c168, %c0_24] : memref<528x32xf32, #tpu.memory_space<vmem>>, vector<1x8xf32>
    %37 = vector.broadcast %36 : vector<1x8xf32> to vector<8x8xf32>
    %38 = arith.addf %35, %37 : vector<8x8xf32>
    %cst_25 = arith.constant 0.000000e+00 : f32
    %39 = vector.broadcast %cst_25 : f32 to vector<8x8xf32>
    %40 = arith.subf %39, %38 : vector<8x8xf32>
    %cst_26 = arith.constant 0.000000e+00 : f32
    %41 = vector.broadcast %cst_26 : f32 to vector<8x8xf32>
    %42 = arith.maximumf %40, %41 : vector<8x8xf32>
    %43 = math.absf %38 : vector<8x8xf32>
    %cst_27 = arith.constant 0.000000e+00 : f32
    %44 = vector.broadcast %cst_27 : f32 to vector<8x8xf32>
    %45 = arith.subf %44, %43 : vector<8x8xf32>
    %46 = math.exp %45 : vector<8x8xf32>
    %47 = math.log1p %46 : vector<8x8xf32>
    %48 = arith.addf %42, %47 : vector<8x8xf32>
    %cst_28 = arith.constant 0.000000e+00 : f32
    %49 = vector.broadcast %cst_28 : f32 to vector<8x8xf32>
    %50 = arith.subf %49, %48 : vector<8x8xf32>
    %51 = math.exp %50 : vector<8x8xf32>
    %52 = arith.mulf %0, %51 : vector<8x8xf32>
    %cst_29 = arith.constant 1.000000e+00 : f32
    %53 = vector.broadcast %cst_29 : f32 to vector<8x8xf32>
    %54 = arith.subf %53, %51 : vector<8x8xf32>
    %55 = arith.mulf %54, %33 : vector<8x8xf32>
    %56 = arith.addf %52, %55 : vector<8x8xf32>
    %57 = arith.mulf %6, %56 : vector<8x8xf32>
    %58 = arith.addf %7, %57 : vector<8x8xf32>
    %cst_30 = arith.constant dense<0.000000e+00> : vector<8x8xf32>
    %59 = tpu.matmul %2, %50, %cst_30 {dimension_numbers = #tpu.dot_dimension_numbers<[1], [1], [0], [0], [0, 0, 1, 0], [], []>} : vector<8x8xf32>, vector<8x8xf32>, vector<8x8xf32> -> vector<8x8xf32>
    %60 = arith.mulf %6, %59 : vector<8x8xf32>
    %61 = arith.addf %1, %60 : vector<8x8xf32>
    %c1 = arith.constant 1 : index
    %c0_31 = arith.constant 0 : index
    %c0_32 = arith.constant 0 : index
    %62 = vector.load %arg2[%c1, %c0_31, %c0_32] : memref<3x8x8xf32, #tpu.memory_space<vmem>>, vector<1x8x8xf32>
    %63 = vector.shape_cast %62 : vector<1x8x8xf32> to vector<8x8xf32>
    %cst_33 = arith.constant 1.000000e+00 : f32
    %64 = vector.broadcast %cst_33 : f32 to vector<8x8xf32>
    %65 = arith.subf %64, %63 : vector<8x8xf32>
    %66 = arith.mulf %63, %58 : vector<8x8xf32>
    %c176 = arith.constant 176 : index
    %c0_34 = arith.constant 0 : index
    %67 = vector.load %arg1[%c176, %c0_34] : memref<528x32xf32, #tpu.memory_space<vmem>>, vector<8x32xf32>
    %cst_35 = arith.constant dense<0.000000e+00> : vector<8x32xf32>
    %68 = tpu.matmul %66, %67, %cst_35 {dimension_numbers = #tpu.dot_dimension_numbers<[1], [0], [0], [1], [0, 0, 1, 1], [], []>} : vector<8x8xf32>, vector<8x32xf32>, vector<8x32xf32> -> vector<8x32xf32>
    %c184 = arith.constant 184 : index
    %c0_36 = arith.constant 0 : index
    %69 = vector.load %arg1[%c184, %c0_36] : memref<528x32xf32, #tpu.memory_space<vmem>>, vector<1x32xf32>
    %70 = vector.broadcast %69 : vector<1x32xf32> to vector<8x32xf32>
    %71 = arith.addf %68, %70 : vector<8x32xf32>
    %cst_37 = arith.constant 0.000000e+00 : f32
    %72 = vector.broadcast %cst_37 : f32 to vector<8x32xf32>
    %73 = arith.maximumf %71, %72 : vector<8x32xf32>
    %c192 = arith.constant 192 : index
    %c0_38 = arith.constant 0 : index
    %74 = vector.load %arg1[%c192, %c0_38] : memref<528x32xf32, #tpu.memory_space<vmem>>, vector<32x32xf32>
    %cst_39 = arith.constant dense<0.000000e+00> : vector<8x32xf32>
    %75 = tpu.matmul %73, %74, %cst_39 {dimension_numbers = #tpu.dot_dimension_numbers<[1], [0], [0], [1], [0, 0, 1, 1], [], []>} : vector<8x32xf32>, vector<32x32xf32>, vector<8x32xf32> -> vector<8x32xf32>
    %c224 = arith.constant 224 : index
    %c0_40 = arith.constant 0 : index
    %76 = vector.load %arg1[%c224, %c0_40] : memref<528x32xf32, #tpu.memory_space<vmem>>, vector<1x32xf32>
    %77 = vector.broadcast %76 : vector<1x32xf32> to vector<8x32xf32>
    %78 = arith.addf %75, %77 : vector<8x32xf32>
    %cst_41 = arith.constant 0.000000e+00 : f32
    %79 = vector.broadcast %cst_41 : f32 to vector<8x32xf32>
    %80 = arith.maximumf %78, %79 : vector<8x32xf32>
    %c232 = arith.constant 232 : index
    %c0_42 = arith.constant 0 : index
    %81 = vector.load %arg1[%c232, %c0_42] : memref<528x32xf32, #tpu.memory_space<vmem>>, vector<32x32xf32>
    %cst_43 = arith.constant dense<0.000000e+00> : vector<8x32xf32>
    %82 = tpu.matmul %80, %81, %cst_43 {dimension_numbers = #tpu.dot_dimension_numbers<[1], [0], [0], [1], [0, 0, 1, 1], [], []>} : vector<8x32xf32>, vector<32x32xf32>, vector<8x32xf32> -> vector<8x32xf32>
    %c264 = arith.constant 264 : index
    %c0_44 = arith.constant 0 : index
    %83 = vector.load %arg1[%c264, %c0_44] : memref<528x32xf32, #tpu.memory_space<vmem>>, vector<1x32xf32>
    %84 = vector.broadcast %83 : vector<1x32xf32> to vector<8x32xf32>
    %85 = arith.addf %82, %84 : vector<8x32xf32>
    %cst_45 = arith.constant 0.000000e+00 : f32
    %86 = vector.broadcast %cst_45 : f32 to vector<8x32xf32>
    %87 = arith.maximumf %85, %86 : vector<8x32xf32>
    %c272 = arith.constant 272 : index
    %c0_46 = arith.constant 0 : index
    %88 = vector.load %arg1[%c272, %c0_46] : memref<528x32xf32, #tpu.memory_space<vmem>>, vector<32x8xf32>
    %cst_47 = arith.constant dense<0.000000e+00> : vector<8x8xf32>
    %89 = tpu.matmul %87, %88, %cst_47 {dimension_numbers = #tpu.dot_dimension_numbers<[1], [0], [0], [1], [0, 0, 1, 1], [], []>} : vector<8x32xf32>, vector<32x8xf32>, vector<8x8xf32> -> vector<8x8xf32>
    %c304 = arith.constant 304 : index
    %c0_48 = arith.constant 0 : index
    %90 = vector.load %arg1[%c304, %c0_48] : memref<528x32xf32, #tpu.memory_space<vmem>>, vector<1x8xf32>
    %91 = vector.broadcast %90 : vector<1x8xf32> to vector<8x8xf32>
    %92 = arith.addf %89, %91 : vector<8x8xf32>
    %c312 = arith.constant 312 : index
    %c0_49 = arith.constant 0 : index
    %93 = vector.load %arg1[%c312, %c0_49] : memref<528x32xf32, #tpu.memory_space<vmem>>, vector<32x8xf32>
    %cst_50 = arith.constant dense<0.000000e+00> : vector<8x8xf32>
    %94 = tpu.matmul %87, %93, %cst_50 {dimension_numbers = #tpu.dot_dimension_numbers<[1], [0], [0], [1], [0, 0, 1, 1], [], []>} : vector<8x32xf32>, vector<32x8xf32>, vector<8x8xf32> -> vector<8x8xf32>
    %c344 = arith.constant 344 : index
    %c0_51 = arith.constant 0 : index
    %95 = vector.load %arg1[%c344, %c0_51] : memref<528x32xf32, #tpu.memory_space<vmem>>, vector<1x8xf32>
    %96 = vector.broadcast %95 : vector<1x8xf32> to vector<8x8xf32>
    %97 = arith.addf %94, %96 : vector<8x8xf32>
    %cst_52 = arith.constant 0.000000e+00 : f32
    %98 = vector.broadcast %cst_52 : f32 to vector<8x8xf32>
    %99 = arith.subf %98, %97 : vector<8x8xf32>
    %cst_53 = arith.constant 0.000000e+00 : f32
    %100 = vector.broadcast %cst_53 : f32 to vector<8x8xf32>
    %101 = arith.maximumf %99, %100 : vector<8x8xf32>
    %102 = math.absf %97 : vector<8x8xf32>
    %cst_54 = arith.constant 0.000000e+00 : f32
    %103 = vector.broadcast %cst_54 : f32 to vector<8x8xf32>
    %104 = arith.subf %103, %102 : vector<8x8xf32>
    %105 = math.exp %104 : vector<8x8xf32>
    %106 = math.log1p %105 : vector<8x8xf32>
    %107 = arith.addf %101, %106 : vector<8x8xf32>
    %cst_55 = arith.constant 0.000000e+00 : f32
    %108 = vector.broadcast %cst_55 : f32 to vector<8x8xf32>
    %109 = arith.subf %108, %107 : vector<8x8xf32>
    %110 = math.exp %109 : vector<8x8xf32>
    %111 = arith.mulf %58, %110 : vector<8x8xf32>
    %cst_56 = arith.constant 1.000000e+00 : f32
    %112 = vector.broadcast %cst_56 : f32 to vector<8x8xf32>
    %113 = arith.subf %112, %110 : vector<8x8xf32>
    %114 = arith.mulf %113, %92 : vector<8x8xf32>
    %115 = arith.addf %111, %114 : vector<8x8xf32>
    %116 = arith.mulf %65, %115 : vector<8x8xf32>
    %117 = arith.addf %66, %116 : vector<8x8xf32>
    %cst_57 = arith.constant dense<0.000000e+00> : vector<8x8xf32>
    %118 = tpu.matmul %2, %109, %cst_57 {dimension_numbers = #tpu.dot_dimension_numbers<[1], [1], [0], [0], [0, 0, 1, 0], [], []>} : vector<8x8xf32>, vector<8x8xf32>, vector<8x8xf32> -> vector<8x8xf32>
    %119 = arith.mulf %65, %118 : vector<8x8xf32>
    %120 = arith.addf %61, %119 : vector<8x8xf32>
    %c2 = arith.constant 2 : index
    %c0_58 = arith.constant 0 : index
    %c0_59 = arith.constant 0 : index
    %121 = vector.load %arg2[%c2, %c0_58, %c0_59] : memref<3x8x8xf32, #tpu.memory_space<vmem>>, vector<1x8x8xf32>
    %122 = vector.shape_cast %121 : vector<1x8x8xf32> to vector<8x8xf32>
    %cst_60 = arith.constant 1.000000e+00 : f32
    %123 = vector.broadcast %cst_60 : f32 to vector<8x8xf32>
    %124 = arith.subf %123, %122 : vector<8x8xf32>
    %125 = arith.mulf %122, %117 : vector<8x8xf32>
    %c352 = arith.constant 352 : index
    %c0_61 = arith.constant 0 : index
    %126 = vector.load %arg1[%c352, %c0_61] : memref<528x32xf32, #tpu.memory_space<vmem>>, vector<8x32xf32>
    %cst_62 = arith.constant dense<0.000000e+00> : vector<8x32xf32>
    %127 = tpu.matmul %125, %126, %cst_62 {dimension_numbers = #tpu.dot_dimension_numbers<[1], [0], [0], [1], [0, 0, 1, 1], [], []>} : vector<8x8xf32>, vector<8x32xf32>, vector<8x32xf32> -> vector<8x32xf32>
    %c360 = arith.constant 360 : index
    %c0_63 = arith.constant 0 : index
    %128 = vector.load %arg1[%c360, %c0_63] : memref<528x32xf32, #tpu.memory_space<vmem>>, vector<1x32xf32>
    %129 = vector.broadcast %128 : vector<1x32xf32> to vector<8x32xf32>
    %130 = arith.addf %127, %129 : vector<8x32xf32>
    %cst_64 = arith.constant 0.000000e+00 : f32
    %131 = vector.broadcast %cst_64 : f32 to vector<8x32xf32>
    %132 = arith.maximumf %130, %131 : vector<8x32xf32>
    %c368 = arith.constant 368 : index
    %c0_65 = arith.constant 0 : index
    %133 = vector.load %arg1[%c368, %c0_65] : memref<528x32xf32, #tpu.memory_space<vmem>>, vector<32x32xf32>
    %cst_66 = arith.constant dense<0.000000e+00> : vector<8x32xf32>
    %134 = tpu.matmul %132, %133, %cst_66 {dimension_numbers = #tpu.dot_dimension_numbers<[1], [0], [0], [1], [0, 0, 1, 1], [], []>} : vector<8x32xf32>, vector<32x32xf32>, vector<8x32xf32> -> vector<8x32xf32>
    %c400 = arith.constant 400 : index
    %c0_67 = arith.constant 0 : index
    %135 = vector.load %arg1[%c400, %c0_67] : memref<528x32xf32, #tpu.memory_space<vmem>>, vector<1x32xf32>
    %136 = vector.broadcast %135 : vector<1x32xf32> to vector<8x32xf32>
    %137 = arith.addf %134, %136 : vector<8x32xf32>
    %cst_68 = arith.constant 0.000000e+00 : f32
    %138 = vector.broadcast %cst_68 : f32 to vector<8x32xf32>
    %139 = arith.maximumf %137, %138 : vector<8x32xf32>
    %c408 = arith.constant 408 : index
    %c0_69 = arith.constant 0 : index
    %140 = vector.load %arg1[%c408, %c0_69] : memref<528x32xf32, #tpu.memory_space<vmem>>, vector<32x32xf32>
    %cst_70 = arith.constant dense<0.000000e+00> : vector<8x32xf32>
    %141 = tpu.matmul %139, %140, %cst_70 {dimension_numbers = #tpu.dot_dimension_numbers<[1], [0], [0], [1], [0, 0, 1, 1], [], []>} : vector<8x32xf32>, vector<32x32xf32>, vector<8x32xf32> -> vector<8x32xf32>
    %c440 = arith.constant 440 : index
    %c0_71 = arith.constant 0 : index
    %142 = vector.load %arg1[%c440, %c0_71] : memref<528x32xf32, #tpu.memory_space<vmem>>, vector<1x32xf32>
    %143 = vector.broadcast %142 : vector<1x32xf32> to vector<8x32xf32>
    %144 = arith.addf %141, %143 : vector<8x32xf32>
    %cst_72 = arith.constant 0.000000e+00 : f32
    %145 = vector.broadcast %cst_72 : f32 to vector<8x32xf32>
    %146 = arith.maximumf %144, %145 : vector<8x32xf32>
    %c448 = arith.constant 448 : index
    %c0_73 = arith.constant 0 : index
    %147 = vector.load %arg1[%c448, %c0_73] : memref<528x32xf32, #tpu.memory_space<vmem>>, vector<32x8xf32>
    %cst_74 = arith.constant dense<0.000000e+00> : vector<8x8xf32>
    %148 = tpu.matmul %146, %147, %cst_74 {dimension_numbers = #tpu.dot_dimension_numbers<[1], [0], [0], [1], [0, 0, 1, 1], [], []>} : vector<8x32xf32>, vector<32x8xf32>, vector<8x8xf32> -> vector<8x8xf32>
    %c480 = arith.constant 480 : index
    %c0_75 = arith.constant 0 : index
    %149 = vector.load %arg1[%c480, %c0_75] : memref<528x32xf32, #tpu.memory_space<vmem>>, vector<1x8xf32>
    %150 = vector.broadcast %149 : vector<1x8xf32> to vector<8x8xf32>
    %151 = arith.addf %148, %150 : vector<8x8xf32>
    %c488 = arith.constant 488 : index
    %c0_76 = arith.constant 0 : index
    %152 = vector.load %arg1[%c488, %c0_76] : memref<528x32xf32, #tpu.memory_space<vmem>>, vector<32x8xf32>
    %cst_77 = arith.constant dense<0.000000e+00> : vector<8x8xf32>
    %153 = tpu.matmul %146, %152, %cst_77 {dimension_numbers = #tpu.dot_dimension_numbers<[1], [0], [0], [1], [0, 0, 1, 1], [], []>} : vector<8x32xf32>, vector<32x8xf32>, vector<8x8xf32> -> vector<8x8xf32>
    %c520 = arith.constant 520 : index
    %c0_78 = arith.constant 0 : index
    %154 = vector.load %arg1[%c520, %c0_78] : memref<528x32xf32, #tpu.memory_space<vmem>>, vector<1x8xf32>
    %155 = vector.broadcast %154 : vector<1x8xf32> to vector<8x8xf32>
    %156 = arith.addf %153, %155 : vector<8x8xf32>
    %cst_79 = arith.constant 0.000000e+00 : f32
    %157 = vector.broadcast %cst_79 : f32 to vector<8x8xf32>
    %158 = arith.subf %157, %156 : vector<8x8xf32>
    %cst_80 = arith.constant 0.000000e+00 : f32
    %159 = vector.broadcast %cst_80 : f32 to vector<8x8xf32>
    %160 = arith.maximumf %158, %159 : vector<8x8xf32>
    %161 = math.absf %156 : vector<8x8xf32>
    %cst_81 = arith.constant 0.000000e+00 : f32
    %162 = vector.broadcast %cst_81 : f32 to vector<8x8xf32>
    %163 = arith.subf %162, %161 : vector<8x8xf32>
    %164 = math.exp %163 : vector<8x8xf32>
    %165 = math.log1p %164 : vector<8x8xf32>
    %166 = arith.addf %160, %165 : vector<8x8xf32>
    %cst_82 = arith.constant 0.000000e+00 : f32
    %167 = vector.broadcast %cst_82 : f32 to vector<8x8xf32>
    %168 = arith.subf %167, %166 : vector<8x8xf32>
    %169 = math.exp %168 : vector<8x8xf32>
    %170 = arith.mulf %117, %169 : vector<8x8xf32>
    %cst_83 = arith.constant 1.000000e+00 : f32
    %171 = vector.broadcast %cst_83 : f32 to vector<8x8xf32>
    %172 = arith.subf %171, %169 : vector<8x8xf32>
    %173 = arith.mulf %172, %151 : vector<8x8xf32>
    %174 = arith.addf %170, %173 : vector<8x8xf32>
    %175 = arith.mulf %124, %174 : vector<8x8xf32>
    %176 = arith.addf %125, %175 : vector<8x8xf32>
    %cst_84 = arith.constant dense<0.000000e+00> : vector<8x8xf32>
    %177 = tpu.matmul %2, %168, %cst_84 {dimension_numbers = #tpu.dot_dimension_numbers<[1], [1], [0], [0], [0, 0, 1, 0], [], []>} : vector<8x8xf32>, vector<8x8xf32>, vector<8x8xf32> -> vector<8x8xf32>
    %178 = arith.mulf %124, %177 : vector<8x8xf32>
    %179 = arith.addf %120, %178 : vector<8x8xf32>
    %c0_85 = arith.constant 0 : index
    %c0_86 = arith.constant 0 : index
    %180 = vector.load %arg4[%c0_85, %c0_86] : memref<8x16xf32, #tpu.memory_space<vmem>>, vector<8x8xf32>
    tpu.vector_store %arg4[%c0_85, %c0_86], %176 {strides = array<i32>} : memref<8x16xf32, #tpu.memory_space<vmem>>, vector<8x8xf32>,
    %c0_87 = arith.constant 0 : index
    %c8_88 = arith.constant 8 : index
    %181 = vector.load %arg4[%c0_87, %c8_88] : memref<8x16xf32, #tpu.memory_space<vmem>>, vector<8x8xf32>
    tpu.vector_store %arg4[%c0_87, %c8_88], %179 {strides = array<i32>} : memref<8x16xf32, #tpu.memory_space<vmem>>, vector<8x8xf32>,
    return
  }
  func.func @transform_0(%arg0: i32) -> (i32, i32) {
    %c0_i32 = arith.constant 0 : i32
    %c0_i32_0 = arith.constant 0 : i32
    %c0_i32_1 = arith.constant 0 : i32
    return %c0_i32, %c0_i32_0 : i32, i32
  }
  func.func @transform_1(%arg0: i32) -> (i32, i32, i32) {
    %c0_i32 = arith.constant 0 : i32
    %c0_i32_0 = arith.constant 0 : i32
    %c0_i32_1 = arith.constant 0 : i32
    %c0_i32_2 = arith.constant 0 : i32
    return %c0_i32, %c0_i32_0, %c0_i32_1 : i32, i32, i32
  }
  func.func @transform_2(%arg0: i32) -> (i32, i32) {
    %c0_i32 = arith.constant 0 : i32
    %c0_i32_0 = arith.constant 0 : i32
    %c0_i32_1 = arith.constant 0 : i32
    return %c0_i32, %c0_i32_0 : i32, i32
  }
  func.func @transform_3(%arg0: i32) -> (i32, i32) {
    %c0_i32 = arith.constant 0 : i32
    %c0_i32_0 = arith.constant 0 : i32
    %c0_i32_1 = arith.constant 0 : i32
    return %c0_i32, %c0_i32_0 : i32, i32
  }
}

</mosaic_0001>

<bundles_post_ra>
// kernel: tpu_custom_call.1
= control target key start
LH: loop header
LB: loop body
LE: loop exit
PB: predicated region body
PF: predicated region fallthrough
CT: control target
= control target key end

     0   :  { %vm25_vm0 = vcmask 64512   ;;  %v1891_v3 = vmov 0.0   ;;  %vm1892_vm1 = vmmov 0   ;;  %s2290_s0 = inlined_call_operand.vmem [shape: f32[528,32], index: 0, kind: input, shape index: {}]   ;;  %s2291_s1 = inlined_call_operand.vmem [shape: f32[3,8,8], index: 1, kind: input, shape index: {}]   ;;  %s2292_s2 = inlined_call_operand.vmem [shape: f32[8,8], index: 2, kind: input, shape index: {}]   ;;  %s2293_s3 = inlined_call_operand.hbm [shape: f32[8,16], index: 3, kind: output, shape index: {}]  }
   0x1   :  { %v19_v0 = vld [vmem:[%s2290_s0] sm:$0xff]  ;;  %1684 = vmatprep.subr.mxu0 %v1891_v3  ;;  %1686 = vmatprep.mubr.msk.f32.mxu0 %vm1892_vm1, %v1891_v3  ;;  %v103_v5 = vld [vmem:[%s2290_s0 + $0x28] sm:$0xff] }
   0x2   :  { %v1922_v1 = vld [vmem:[%s2292_s2] sm:$0xff] }
   0x3   :  { %v1927_v2 = vld [vmem:[%s2291_s1] sm:$0xff] }
   0x4   :  { %v1934_v4 = vmul.f32 %v1927_v2, %v1922_v1 }
   0x5   :  { %8 = vsyncpa [#allocation3], 0  ;;  %1685 = vmatpush3.msra.mxu0 %v19_v0  ;;  %1689 = vmatprep.subr.mxu1 %v1891_v3  ;;  %v102_v6 = vld [vmem:[%s2290_s0 + $0x20] sm:$0xff]  ;;  %v101_v7 = vld [vmem:[%s2290_s0 + $0x18] sm:$0xff]  ;;  %vm109_vm2 = vcmask 261120   ;;  %v1893_v61 = vmov 1.0  }
   0x6   :  { %1687 = vmatmul.mubr.msk.f32.vlgmr.msra.gmra.mxu0 %vm25_vm0, %v1934_v4  ;;  %1690 = vmatpush3.msra.mxu1 %v103_v5  ;;  %v100_v8 = vld [vmem:[%s2290_s0 + $0x10] sm:$0xff]  ;;  %v1574_v10 = vld [vmem:[%s2290_s0 + $0x8] ss:$0 sm:$0xff]  ;;  %v185_v16 = vld [vmem:[%s2290_s0 + $0x40] sm:$0xff]  ;;  %s1895_s10 = smov [#allocation2]   ;;  %vm1558_vm6 = vcmask 130112  }
   0x7   :  { %1691 = vmatprep.subr.mxu1 %v1891_v3  ;;  %1697 = vmatprep.mubr.msk.f32.mxu1 %vm1892_vm1, %v1891_v3  ;;  %v187_v9 = vld [vmem:[%s2290_s0 + $0x50] sm:$0xff]  ;;  %v186_v15 = vld [vmem:[%s2290_s0 + $0x48] sm:$0xff]  ;;  %v184_v17 = vld [vmem:[%s2290_s0 + $0x38] sm:$0xff]  ;;  %s1566_s11 = sshll.u32 %s1895_s10, 4  ;;  %s1567_s11 = int_to_ptr.vmem [resolvable:$true] %s1566_s11 }
   0x8   :  { %1700 = vmatprep.subr.mxu0 %v1891_v3  ;;  %1708 = vmatprep.mubr.msk.f32.mxu0 %vm1892_vm1, %v1891_v3  ;;  %v270_v18 = vld [vmem:[%s2290_s0 + $0x78] sm:$0xff]  ;;  %v1576_v19 = vld [vmem:[%s2290_s0 + $0x30] ss:$0 sm:$0xff]  ;;  %v352_v24 = vld [vmem:[%s2290_s0 + $0xa0] sm:$0xff]  ;;  %s1869_s12 = scalar_lea.vmem %s1567_s11, 128  ;;  %p1874_p1 = scmp.lt.s32.totalorder %s1567_s11, %s1567_s11 }
   0x9   :  { %1692 = vmatpush3.msra.mxu1 %v102_v6  ;;  %1701 = vmatpush3.msra.mxu0 %v187_v9  ;;  %v269_v25 = vld [vmem:[%s2290_s0 + $0x70] sm:$0xff]  ;;  %v351_v26 = vld [vmem:[%s2290_s0 + $0x98] sm:$0xff]  ;;  %v268_v27 = vld [vmem:[%s2290_s0 + $0x68] sm:$0xff]  ;;  %v17_v6 = vsub.f32 1.0, %v1927_v2  ;;  %p1870_p0 = scmp.ne.s32.totalorder %s1567_s11, %s1869_s12  ;;  %p1875_p2 = scmp.lt.s32.totalorder %s1869_s12, %s1869_s12 }
   0xa   :  { %1693 = vmatprep.subr.mxu1 %v1891_v3  ;;  %1702 = vmatprep.subr.mxu0 %v1891_v3  ;;  %v350_v28 = vld [vmem:[%s2290_s0 + $0x90] sm:$0xff]  ;;  %v267_v29 = vld [vmem:[%s2290_s0 + $0x60] sm:$0xff]  ;;  %v349_v30 = vld [vmem:[%s2290_s0 + $0x88] sm:$0xff] }
   0xb   :  { %1694 = vmatpush3.msra.mxu1 %v101_v7  ;;  %1703 = vmatpush3.msra.mxu0 %v186_v15  ;;  %v1578_v31 = vld [vmem:[%s2290_s0 + $0x58] ss:$0 sm:$0xff]  ;;  %v535_v36 = vld [vmem:[%s2290_s0 + $0xb0] sm:$0xff]  ;;  %v1582_v37 = vld [vmem:[%s2290_s0 + $0xa8] ss:$0 sm:$0xff]  ;;  %p1876_p3 = por %p1875_p2, %p1874_p1 }
   0xc   :  { %1695 = vmatprep.subr.mxu1 %v1891_v3  ;;  %1704 = vmatprep.subr.mxu0 %v1891_v3  ;;  %v618_v60 = vld [vmem:[%s2290_s0 + $0xd8] sm:$0xff]  ;;  %v1580_v62 = vld [vmem:[%s2290_s0 + $0x80] ss:$0 sm:$0xff]  ;;  %v1211_v2 = vld [vmem:[%s2290_s0 + $0x1a8] sm:$0xff] }
   0xd   :  { %1696 = vmatpush3.msra.mxu1 %v100_v8  ;;  %1705 = vmatpush3.msra.mxu0 %v185_v16  ;;  %v701_v15 = vld [vmem:[%s2290_s0 + $0x100] sm:$0xff]  ;;  %p1877_p4 = pnand %p1876_p3, %p1870_p0 }
   0xe   :  { %1711 = vmatprep.subr.mxu1 %v1891_v3  ;;  %1706 = vmatprep.subr.mxu0 %v1891_v3 }
   0xf   :  { %1707 = vmatpush3.msra.mxu0 %v184_v17 }
  0x10   :  { %1722 = vmatprep.subr.mxu0 %v1891_v3 }
  0xc6   :  { %v95_v11 = vpop.f32.mrf.mxu0 }
  0xc7   :  { %v96_v12 = vadd.f32 %v1574_v10, %v95_v11  ;;  %v2056_v11 = vld [vmem:[%s2291_s1 + $0x8] sm:$0xff] }
  0xc8   :  { %v1688_v13 = vpop.f32.mrf.mxu0 }
  0xc9   :  { %v99_v14 = vmax.f32 %v96_v12, 0.0 }
  0xcb   :  { %1698 = vmatmul.mubr.msk.f32.vlgmr.msra.gmra.mxu1 %vm109_vm2, %v99_v14  ;;  %v615_v14 = vld [vmem:[%s2290_s0 + $0xc0] sm:$0xff] }
  0xcc   :  { %1719 = vmatprep.mubr.msk.f32.mxu1 %vm1892_vm1, %v1891_v3  ;;  %1712 = vmatpush3.msra.mxu1 %v270_v18  ;;  %v1587_v18 = vld [vmem:[%s2290_s0 + $0xb8] ss:$0 sm:$0xff] }
  0xcd   :  { %1713 = vmatprep.subr.mxu1 %v1891_v3 }
  0xce   :  { %1714 = vmatpush3.msra.mxu1 %v269_v25  ;;  %v698_v25 = vld [vmem:[%s2290_s0 + $0xe8] sm:$0xff] }
  0xcf   :  { %1715 = vmatprep.subr.mxu1 %v1891_v3 }
  0xd0   :  { %1716 = vmatpush3.msra.mxu1 %v268_v27  ;;  %v1589_v27 = vld [vmem:[%s2290_s0 + $0xe0] ss:$0 sm:$0xff] }
  0xd1   :  { %1717 = vmatprep.subr.mxu1 %v1891_v3 }
  0xd2   :  { %1718 = vmatpush3.msra.mxu1 %v267_v29 }
  0xd3   :  { %1733 = vmatprep.subr.mxu1 %v1891_v3 }
 0x18b   :  { %v179_v20 = vpop.f32.mrf.mxu1 }
 0x18c   :  { %v180_v21 = vadd.f32 %v1576_v19, %v179_v20 }
 0x18d   :  { %v1699_v22 = vpop.f32.mrf.mxu1 }
 0x18e   :  { %v183_v23 = vmax.f32 %v180_v21, 0.0 }
 0x190   :  { %1709 = vmatmul.mubr.msk.f32.vlgmr.msra.gmra.mxu0 %vm109_vm2, %v183_v23  ;;  %v700_v23 = vld [vmem:[%s2290_s0 + $0xf8] sm:$0xff] }
 0x191   :  { %1723 = vmatpush3.msra.mxu0 %v352_v24  ;;  %1730 = vmatprep.mubr.msk.f32.mxu0 %vm1892_vm1, %v1891_v3  ;;  %v699_v24 = vld [vmem:[%s2290_s0 + $0xf0] sm:$0xff] }
 0x192   :  { %1724 = vmatprep.subr.mxu0 %v1891_v3 }
 0x193   :  { %1725 = vmatpush3.msra.mxu0 %v351_v26  ;;  %v784_v26 = vld [vmem:[%s2290_s0 + $0x128] sm:$0xff] }
 0x194   :  { %1726 = vmatprep.subr.mxu0 %v1891_v3 }
 0x195   :  { %1727 = vmatpush3.msra.mxu0 %v350_v28 }
 0x196   :  { %1728 = vmatprep.subr.mxu0 %v1891_v3 }
 0x197   :  { %1729 = vmatpush3.msra.mxu0 %v349_v30 }
 0x198   :  { %1738 = vmatprep.subr.mxu0 %v1891_v3 }
 0x250   :  { %v262_v32 = vpop.f32.mrf.mxu0 }
 0x251   :  { %v263_v33 = vadd.f32 %v1578_v31, %v262_v32  ;;  %v866_v32 = vld [vmem:[%s2290_s0 + $0x150] sm:$0xff] }
 0x252   :  { %v1710_v34 = vpop.f32.mrf.mxu0 }
 0x253   :  { %v266_v35 = vmax.f32 %v263_v33, 0.0  ;;  %v783_v33 = vld [vmem:[%s2290_s0 + $0x120] sm:$0xff]  ;;  %v865_v34 = vld [vmem:[%s2290_s0 + $0x148] sm:$0xff] }
 0x255   :  { %1720 = vmatmul.mubr.msk.f32.vlgmr.msra.gmra.mxu1 %vm109_vm2, %v266_v35  ;;  %1731 = vmatmul.mubr.msk.f32.vlgmr.msra.gmra.mxu0 %vm109_vm2, %v266_v35  ;;  %v782_v35 = vld [vmem:[%s2290_s0 + $0x118] sm:$0xff] }
 0x256   :  { %1740 = vmatprep.mubr.msk.f32.mxu0 %vm1892_vm1, %v1891_v3  ;;  %1735 = vmatprep.mubr.msk.f32.mxu1 %vm1892_vm1, %v1891_v3 }
 0x257   :  { %1739 = vmatpush3.msra.mxu0 %v535_v36  ;;  %v864_v36 = vld [vmem:[%s2290_s0 + $0x140] sm:$0xff] }
 0x258   :  { %1754 = vmatprep.subr.mxu0 %v1891_v3 }
 0x315   :  { %v345_v38 = vpop.f32.mrf.mxu1  ;;  %v424_v39 = vpop.f32.mrf.mxu0 }
 0x316   :  { %v425_v40 = vadd.f32 %v1582_v37, %v424_v39  ;;  %v346_v0 = vadd.f32 %v1580_v62, %v345_v38  ;;  %v781_v37 = vld [vmem:[%s2290_s0 + $0x110] sm:$0xff]  ;;  %v863_v38 = vld [vmem:[%s2290_s0 + $0x138] sm:$0xff]  ;;  %v1591_v39 = vld [vmem:[%s2290_s0 + $0x108] ss:$0 sm:$0xff] }
 0x317   :  { %v1721_v41 = vpop.f32.mrf.mxu1  ;;  %v1732_v42 = vpop.f32.mrf.mxu0 }
 0x318   :  { %v430_v43 = vand.u32 2147483647, %v425_v40  ;;  %v428_v50 = vsub.f32 0.0, %v425_v40 }
 0x31a   :  { %v431_v44 = vsub.f32 0.0, %v430_v43  ;;  %v429_v55 = vmax.f32 %v428_v50, 0.0 }
 0x31c   :  { %v432_v45 = vmul.f32 1.442695, %v431_v44  ;;  %v1046_v44 = vld [vmem:[%s2290_s0 + $0x160] sm:$0xff] }
 0x31e   :  { %1851 = vpow2.f32 %v432_v45  ;;  %v1595_v45 = vld [vmem:[%s2290_s0 + $0x158] ss:$0 sm:$0xff] }
 0x32b   :  { %v1852_v46 = vpop.eup %1851 }
 0x32c   :  { %v434_v47 = vadd.f32 1.0, %v1852_v46  ;;  %v437_v48 = vmul.f32 -0.5, %v1852_v46  ;;  %v440_v51 = vand.u32 2147483647, %v1852_v46 }
 0x32e   :  { %1853 = vlog2.f32 %v434_v47  ;;  %v438_v49 = vadd.f32 1.0, %v437_v48  ;;  %vm441_vm3 = vcmp.lt.f32.partialorder %v440_v51, 0.0004427343 }
 0x330   :  { %v439_v54 = vmul.f32 %v1852_v46, %v438_v49 }
 0x33b   :  { %v1854_v52 = vpop.eup %1853 }
 0x33c   :  { %v436_v53 = vmul.f32 0.6931472, %v1854_v52 }
 0x33e   :  { %v442_v56 = vsel %vm441_vm3, %v439_v54, %v436_v53 }
 0x33f   :  { %v443_v57 = vadd.f32 %v442_v56, %v429_v55 }
 0x341   :  { %v444_v58 = vsub.f32 0.0, %v443_v57 }
 0x343   :  { %v445_v59 = vmul.f32 1.442695, %v444_v58  ;;  %1734 = vmatpush3.xpose.msk.msra.mxu1 %vm25_vm0, %v444_v58 }
 0x344   :  { %1743 = vmatprep.subr.mxu1 %v1891_v3 }
 0x345   :  { %1855 = vpow2.f32 %v445_v59 }
 0x346   :  { %1736 = vmatmul.mubr.msk.f32.vlgmr.msra.gmra.mxu1 %vm25_vm0, %v1893_v61 }
 0x347   :  { %1744 = vmatpush3.msra.mxu1 %v618_v60  ;;  %1751 = vmatprep.mubr.msk.f32.mxu1 %vm1892_vm1, %v1891_v3 }
 0x348   :  { %1745 = vmatprep.subr.mxu1 %v1891_v3 }
 0x352   :  { %v1856_v63 = vpop.eup %1855 }
 0x353   :  { %v448_v5 = vsub.f32 1.0, %v1856_v63  ;;  %v447_v7 = vmul.f32 %v1856_v63, %v1922_v1  ;;  %v617_v1 = vld [vmem:[%s2290_s0 + $0xd0] sm:$0xff] }
 0x354   :  { %1746 = vmatpush3.msra.mxu1 %v617_v1 }
 0x355   :  { %v449_v8 = vmul.f32 %v448_v5, %v346_v0  ;;  %1747 = vmatprep.subr.mxu1 %v1891_v3 }
 0x357   :  { %v450_v9 = vadd.f32 %v449_v8, %v447_v7 }
 0x359   :  { %v451_v10 = vmul.f32 %v450_v9, %v17_v6 }
 0x35b   :  { %v2059_v12 = vadd.f32 %v451_v10, %v1934_v4  ;;  %v616_v4 = vld [vmem:[%s2290_s0 + $0xc8] sm:$0xff]  ;;  %v1593_v10 = vld [vmem:[%s2290_s0 + $0x130] ss:$0 sm:$0xff] }
 0x35c   :  { %1748 = vmatpush3.msra.mxu1 %v616_v4 }
 0x35d   :  { %v2063_v13 = vmul.f32 %v2056_v11, %v2059_v12  ;;  %1749 = vmatprep.subr.mxu1 %v1891_v3 }
 0x35e   :  { %1750 = vmatpush3.msra.mxu1 %v615_v14 }
 0x35f   :  { %1741 = vmatmul.mubr.msk.f32.vlgmr.msra.gmra.mxu0 %vm25_vm0, %v2063_v13  ;;  %1765 = vmatprep.subr.mxu1 %v1891_v3 }
 0x360   :  { %1762 = vmatprep.mubr.msk.f32.mxu0 %vm1892_vm1, %v1891_v3  ;;  %1755 = vmatpush3.msra.mxu0 %v701_v15  ;;  %v533_v15 = vsub.f32 1.0, %v2056_v11  ;;  %v1129_v11 = vld [vmem:[%s2290_s0 + $0x188] sm:$0xff] }
 0x361   :  { %1756 = vmatprep.subr.mxu0 %v1891_v3 }
 0x362   :  { %1757 = vmatpush3.msra.mxu0 %v700_v23 }
 0x363   :  { %1758 = vmatprep.subr.mxu0 %v1891_v3 }
 0x364   :  { %1759 = vmatpush3.msra.mxu0 %v699_v24  ;;  %v1126_v24 = vld [vmem:[%s2290_s0 + $0x170] sm:$0xff] }
 0x365   :  { %1760 = vmatprep.subr.mxu0 %v1891_v3 }
 0x366   :  { %1761 = vmatpush3.msra.mxu0 %v698_v25  ;;  %v1212_v25 = vld [vmem:[%s2290_s0 + $0x1b0] sm:$0xff] }
 0x367   :  { %1776 = vmatprep.subr.mxu0 %v1891_v3 }
 0x406   :  { %v2085_v16 = vpop.f32.mrf.mxu1 }
 0x408   :  { %v1737_v17 = vpop.f32.mrf.mxu1 }
 0x41f   :  { %v610_v19 = vpop.f32.mrf.mxu0 }
 0x420   :  { %v611_v20 = vadd.f32 %v1587_v18, %v610_v19 }
 0x421   :  { %v1742_v21 = vpop.f32.mrf.mxu0 }
 0x422   :  { %v614_v22 = vmax.f32 %v611_v20, 0.0  ;;  %v2173_v21 = vld [vmem:[%s2291_s1 + $0x10] sm:$0xff] }
 0x424   :  { %1752 = vmatmul.mubr.msk.f32.vlgmr.msra.gmra.mxu1 %vm109_vm2, %v614_v22 }
 0x425   :  { %1773 = vmatprep.mubr.msk.f32.mxu1 %vm1892_vm1, %v1891_v3  ;;  %1766 = vmatpush3.msra.mxu1 %v784_v26 }
 0x426   :  { %1767 = vmatprep.subr.mxu1 %v1891_v3 }
 0x427   :  { %1768 = vmatpush3.msra.mxu1 %v783_v33 }
 0x428   :  { %1769 = vmatprep.subr.mxu1 %v1891_v3 }
 0x429   :  { %1770 = vmatpush3.msra.mxu1 %v782_v35 }
 0x42a   :  { %1771 = vmatprep.subr.mxu1 %v1891_v3 }
 0x42b   :  { %1772 = vmatpush3.msra.mxu1 %v781_v37  ;;  %v1602_v37 = vld [vmem:[%s2290_s0 + $0x190] ss:$0 sm:$0xff] }
 0x42c   :  { %1787 = vmatprep.subr.mxu1 %v1891_v3 }
 0x4e4   :  { %v693_v28 = vpop.f32.mrf.mxu1 }
 0x4e5   :  { %v694_v29 = vadd.f32 %v1589_v27, %v693_v28  ;;  %v529_v27 = vmul.f32 %v2085_v16, %v17_v6  ;;  %v1210_v6 = vld [vmem:[%s2290_s0 + $0x1a0] sm:$0xff]  ;;  %v1209_v16 = vld [vmem:[%s2290_s0 + $0x198] sm:$0xff] }
 0x4e6   :  { %v1753_v30 = vpop.f32.mrf.mxu1 }
 0x4e7   :  { %v697_v31 = vmax.f32 %v694_v29, 0.0 }
 0x4e9   :  { %1763 = vmatmul.mubr.msk.f32.vlgmr.msra.gmra.mxu0 %vm109_vm2, %v697_v31  ;;  %v1600_v31 = vld [vmem:[%s2290_s0 + $0x168] ss:$0 sm:$0xff] }
 0x4ea   :  { %1777 = vmatpush3.msra.mxu0 %v866_v32  ;;  %1784 = vmatprep.mubr.msk.f32.mxu0 %vm1892_vm1, %v1891_v3 }
 0x4eb   :  { %1778 = vmatprep.subr.mxu0 %v1891_v3 }
 0x4ec   :  { %1779 = vmatpush3.msra.mxu0 %v865_v34 }
 0x4ed   :  { %1780 = vmatprep.subr.mxu0 %v1891_v3 }
 0x4ee   :  { %1781 = vmatpush3.msra.mxu0 %v864_v36  ;;  %v1295_v36 = vld [vmem:[%s2290_s0 + $0x1d8] sm:$0xff] }
 0x4ef   :  { %1782 = vmatprep.subr.mxu0 %v1891_v3 }
 0x4f0   :  { %1783 = vmatpush3.msra.mxu0 %v863_v38 }
 0x4f1   :  { %1792 = vmatprep.subr.mxu0 %v1891_v3 }
 0x5a9   :  { %v776_v40 = vpop.f32.mrf.mxu0 }
 0x5aa   :  { %v777_v41 = vadd.f32 %v1591_v39, %v776_v40 }
 0x5ab   :  { %v1764_v42 = vpop.f32.mrf.mxu0 }
 0x5ac   :  { %v780_v43 = vmax.f32 %v777_v41, 0.0  ;;  %v1377_v42 = vld [vmem:[%s2290_s0 + $0x200] sm:$0xff] }
 0x5ae   :  { %1774 = vmatmul.mubr.msk.f32.vlgmr.msra.gmra.mxu1 %vm109_vm2, %v780_v43  ;;  %1785 = vmatmul.mubr.msk.f32.vlgmr.msra.gmra.mxu0 %vm109_vm2, %v780_v43  ;;  %v1294_v43 = vld [vmem:[%s2290_s0 + $0x1d0] sm:$0xff] }
 0x5af   :  { %1789 = vmatprep.mubr.msk.f32.mxu1 %vm1892_vm1, %v1891_v3  ;;  %1794 = vmatprep.mubr.msk.f32.mxu0 %vm1892_vm1, %v1891_v3 }
 0x5b0   :  { %1793 = vmatpush3.msra.mxu0 %v1046_v44  ;;  %v1376_v44 = vld [vmem:[%s2290_s0 + $0x1f8] sm:$0xff] }
 0x5b1   :  { %1808 = vmatprep.subr.mxu0 %v1891_v3 }
 0x66e   :  { %v859_v46 = vpop.f32.mrf.mxu1  ;;  %v938_v47 = vpop.f32.mrf.mxu0 }
 0x66f   :  { %v939_v48 = vadd.f32 %v1595_v45, %v938_v47  ;;  %v860_v4 = vadd.f32 %v1593_v10, %v859_v46  ;;  %v1293_v45 = vld [vmem:[%s2290_s0 + $0x1c8] sm:$0xff]  ;;  %v1375_v46 = vld [vmem:[%s2290_s0 + $0x1f0] sm:$0xff]  ;;  %v1292_v47 = vld [vmem:[%s2290_s0 + $0x1c0] sm:$0xff] }
 0x670   :  { %v1775_v49 = vpop.f32.mrf.mxu1  ;;  %v1786_v50 = vpop.f32.mrf.mxu0 }
 0x671   :  { %v944_v51 = vand.u32 2147483647, %v939_v48  ;;  %v942_v58 = vsub.f32 0.0, %v939_v48  ;;  %v1374_v48 = vld [vmem:[%s2290_s0 + $0x1e8] sm:$0xff]  ;;  %v1604_v49 = vld [vmem:[%s2290_s0 + $0x1b8] ss:$0 sm:$0xff] }
 0x673   :  { %v945_v52 = vsub.f32 0.0, %v944_v51  ;;  %v943_v0 = vmax.f32 %v942_v58, 0.0 }
 0x675   :  { %v946_v53 = vmul.f32 1.442695, %v945_v52 }
 0x677   :  { %1857 = vpow2.f32 %v946_v53 }
 0x684   :  { %v1858_v54 = vpop.eup %1857 }
 0x685   :  { %v948_v55 = vadd.f32 1.0, %v1858_v54  ;;  %v951_v56 = vmul.f32 -0.5, %v1858_v54  ;;  %v954_v59 = vand.u32 2147483647, %v1858_v54 }
 0x687   :  { %1859 = vlog2.f32 %v948_v55  ;;  %v952_v57 = vadd.f32 1.0, %v951_v56  ;;  %vm955_vm4 = vcmp.lt.f32.partialorder %v954_v59, 0.0004427343 }
 0x689   :  { %v953_v63 = vmul.f32 %v1858_v54, %v952_v57  ;;  %v1608_v54 = vld [vmem:[%s2290_s0 + $0x208] ss:$0 sm:$0xff] }
 0x694   :  { %v1860_v60 = vpop.eup %1859 }
 0x695   :  { %v950_v62 = vmul.f32 0.6931472, %v1860_v60 }
 0x697   :  { %v956_v5 = vsel %vm955_vm4, %v953_v63, %v950_v62 }
 0x698   :  { %v957_v7 = vadd.f32 %v956_v5, %v943_v0 }
 0x69a   :  { %v958_v8 = vsub.f32 0.0, %v957_v7 }
 0x69c   :  { %v959_v9 = vmul.f32 1.442695, %v958_v8  ;;  %1788 = vmatpush3.xpose.msk.msra.mxu1 %vm25_vm0, %v958_v8 }
 0x69d   :  { %1797 = vmatprep.subr.mxu1 %v1891_v3 }
 0x69e   :  { %1861 = vpow2.f32 %v959_v9 }
 0x69f   :  { %1790 = vmatmul.mubr.msk.f32.vlgmr.msra.gmra.mxu1 %vm25_vm0, %v1893_v61 }
 0x6a0   :  { %1805 = vmatprep.mubr.msk.f32.mxu1 %vm1892_vm1, %v1891_v3  ;;  %1798 = vmatpush3.msra.mxu1 %v1129_v11 }
 0x6a1   :  { %1799 = vmatprep.subr.mxu1 %v1891_v3 }
 0x6ab   :  { %v1862_v1 = vpop.eup %1861 }
 0x6ac   :  { %v962_v14 = vsub.f32 1.0, %v1862_v1  ;;  %v961_v17 = vmul.f32 %v1862_v1, %v2059_v12  ;;  %v1128_v12 = vld [vmem:[%s2290_s0 + $0x180] sm:$0xff] }
 0x6ad   :  { %1800 = vmatpush3.msra.mxu1 %v1128_v12 }
 0x6ae   :  { %v963_v18 = vmul.f32 %v962_v14, %v860_v4  ;;  %1801 = vmatprep.subr.mxu1 %v1891_v3 }
 0x6b0   :  { %v964_v19 = vadd.f32 %v963_v18, %v961_v17 }
 0x6b2   :  { %v965_v20 = vmul.f32 %v964_v19, %v533_v15 }
 0x6b4   :  { %v2176_v22 = vadd.f32 %v965_v20, %v2063_v13  ;;  %v1127_v13 = vld [vmem:[%s2290_s0 + $0x178] sm:$0xff]  ;;  %v1606_v20 = vld [vmem:[%s2290_s0 + $0x1e0] ss:$0 sm:$0xff]  ;;  %s1894_s0 = smov 8  }
 0x6b5   :  { %1802 = vmatpush3.msra.mxu1 %v1127_v13 }
 0x6b6   :  { %v2180_v23 = vmul.f32 %v2173_v21, %v2176_v22  ;;  %1803 = vmatprep.subr.mxu1 %v1891_v3 }
 0x6b7   :  { %1804 = vmatpush3.msra.mxu1 %v1126_v24  ;;  %v1044_v24 = vsub.f32 1.0, %v2173_v21 }
 0x6b8   :  { %1795 = vmatmul.mubr.msk.f32.vlgmr.msra.gmra.mxu0 %vm25_vm0, %v2180_v23  ;;  %1819 = vmatprep.subr.mxu1 %v1891_v3 }
 0x6b9   :  { %1816 = vmatprep.mubr.msk.f32.mxu0 %vm1892_vm1, %v1891_v3  ;;  %1809 = vmatpush3.msra.mxu0 %v1212_v25 }
 0x6ba   :  { %1810 = vmatprep.subr.mxu0 %v1891_v3 }
 0x6bb   :  { %1811 = vmatpush3.msra.mxu0 %v1211_v2 }
 0x6bc   :  { %1812 = vmatprep.subr.mxu0 %v1891_v3 }
 0x6bd   :  { %1813 = vmatpush3.msra.mxu0 %v1210_v6 }
 0x6be   :  { %1814 = vmatprep.subr.mxu0 %v1891_v3 }
 0x6bf   :  { %1815 = vmatpush3.msra.mxu0 %v1209_v16 }
 0x6c0   :  { %1830 = vmatprep.subr.mxu0 %v1891_v3 }
 0x75f   :  { %v1036_v26 = vpop.f32.mrf.mxu1 }
 0x760   :  { %v1040_v28 = vmul.f32 %v1036_v26, %v533_v15 }
 0x761   :  { %v1791_v29 = vpop.f32.mrf.mxu1 }
 0x762   :  { %v2209_v30 = vadd.f32 %v1040_v28, %v529_v27 }
 0x778   :  { %v1121_v32 = vpop.f32.mrf.mxu0 }
 0x779   :  { %v1122_v33 = vadd.f32 %v1600_v31, %v1121_v32 }
 0x77a   :  { %v1796_v34 = vpop.f32.mrf.mxu0 }
 0x77b   :  { %v1125_v35 = vmax.f32 %v1122_v33, 0.0 }
 0x77d   :  { %1806 = vmatmul.mubr.msk.f32.vlgmr.msra.gmra.mxu1 %vm109_vm2, %v1125_v35 }
 0x77e   :  { %1827 = vmatprep.mubr.msk.f32.mxu1 %vm1892_vm1, %v1891_v3  ;;  %1820 = vmatpush3.msra.mxu1 %v1295_v36 }
 0x77f   :  { %1821 = vmatprep.subr.mxu1 %v1891_v3 }
 0x780   :  { %1822 = vmatpush3.msra.mxu1 %v1294_v43 }
 0x781   :  { %1823 = vmatprep.subr.mxu1 %v1891_v3 }
 0x782   :  { %1824 = vmatpush3.msra.mxu1 %v1293_v45 }
 0x783   :  { %1825 = vmatprep.subr.mxu1 %v1891_v3 }
 0x784   :  { %1826 = vmatpush3.msra.mxu1 %v1292_v47 }
 0x785   :  { %1841 = vmatprep.subr.mxu1 %v1891_v3 }
 0x83d   :  { %v1204_v38 = vpop.f32.mrf.mxu1 }
 0x83e   :  { %v1205_v39 = vadd.f32 %v1602_v37, %v1204_v38 }
 0x83f   :  { %v1807_v40 = vpop.f32.mrf.mxu1 }
 0x840   :  { %v1208_v41 = vmax.f32 %v1205_v39, 0.0 }
 0x842   :  { %1817 = vmatmul.mubr.msk.f32.vlgmr.msra.gmra.mxu0 %vm109_vm2, %v1208_v41 }
 0x843   :  { %1831 = vmatpush3.msra.mxu0 %v1377_v42  ;;  %1838 = vmatprep.mubr.msk.f32.mxu0 %vm1892_vm1, %v1891_v3 }
 0x844   :  { %1832 = vmatprep.subr.mxu0 %v1891_v3 }
 0x845   :  { %1833 = vmatpush3.msra.mxu0 %v1376_v44 }
 0x846   :  { %1834 = vmatprep.subr.mxu0 %v1891_v3 }
 0x847   :  { %1835 = vmatpush3.msra.mxu0 %v1375_v46 }
 0x848   :  { %1836 = vmatprep.subr.mxu0 %v1891_v3 }
 0x849   :  { %1837 = vmatpush3.msra.mxu0 %v1374_v48 }
 0x902   :  { %v1287_v50 = vpop.f32.mrf.mxu0 }
 0x903   :  { %v1288_v51 = vadd.f32 %v1604_v49, %v1287_v50 }
 0x904   :  { %v1818_v52 = vpop.f32.mrf.mxu0 }
 0x905   :  { %v1291_v53 = vmax.f32 %v1288_v51, 0.0 }
 0x907   :  { %1828 = vmatmul.mubr.msk.f32.vlgmr.msra.gmra.mxu1 %vm109_vm2, %v1291_v53  ;;  %1839 = vmatmul.mubr.msk.f32.vlgmr.msra.gmra.mxu0 %vm109_vm2, %v1291_v53 }
 0x908   :  { %1843 = vmatprep.mubr.msk.f32.mxu1 %vm1892_vm1, %v1891_v3 }
 0x9c7   :  { %v1370_v55 = vpop.f32.mrf.mxu1  ;;  %v1449_v56 = vpop.f32.mrf.mxu0 }
 0x9c8   :  { %v1450_v57 = vadd.f32 %v1608_v54, %v1449_v56  ;;  %v1371_v12 = vadd.f32 %v1606_v20, %v1370_v55 }
 0x9c9   :  { %v1829_v58 = vpop.f32.mrf.mxu1  ;;  %v1840_v59 = vpop.f32.mrf.mxu0 }
 0x9ca   :  { %v1455_v60 = vand.u32 2147483647, %v1450_v57  ;;  %v1453_v9 = vsub.f32 0.0, %v1450_v57 }
 0x9cc   :  { %v1456_v62 = vsub.f32 0.0, %v1455_v60  ;;  %v1454_v14 = vmax.f32 %v1453_v9, 0.0 }
 0x9ce   :  { %v1457_v63 = vmul.f32 1.442695, %v1456_v62 }
 0x9d0   :  { %1863 = vpow2.f32 %v1457_v63 }
 0x9dd   :  { %v1864_v0 = vpop.eup %1863 }
 0x9de   :  { %v1459_v5 = vadd.f32 1.0, %v1864_v0  ;;  %v1462_v7 = vmul.f32 -0.5, %v1864_v0  ;;  %v1465_v3 = vand.u32 2147483647, %v1864_v0 }
 0x9e0   :  { %1865 = vlog2.f32 %v1459_v5  ;;  %v1463_v8 = vadd.f32 1.0, %v1462_v7  ;;  %vm1466_vm5 = vcmp.lt.f32.partialorder %v1465_v3, 0.0004427343 }
 0x9e2   :  { %v1464_v4 = vmul.f32 %v1864_v0, %v1463_v8 }
 0x9ed   :  { %v1866_v10 = vpop.eup %1865 }
 0x9ee   :  { %v1461_v1 = vmul.f32 0.6931472, %v1866_v10 }
 0x9f0   :  { %v1467_v15 = vsel %vm1466_vm5, %v1464_v4, %v1461_v1 }
 0x9f1   :  { %v1468_v17 = vadd.f32 %v1467_v15, %v1454_v14 }
 0x9f3   :  { %v1469_v18 = vsub.f32 0.0, %v1468_v17 }
 0x9f5   :  { %v1470_v19 = vmul.f32 1.442695, %v1469_v18  ;;  %1842 = vmatpush3.xpose.msk.msra.mxu1 %vm25_vm0, %v1469_v18 }
 0x9f7   :  { %1867 = vpow2.f32 %v1470_v19 }
 0x9f8   :  { %1844 = vmatmul.mubr.msk.f32.vlgmr.msra.gmra.mxu1 %vm25_vm0, %v1893_v61 }
 0xa04   :  { %v1868_v11 = vpop.eup %1867 }
 0xa05   :  { %v1473_v13 = vsub.f32 1.0, %v1868_v11  ;;  %v1472_v25 = vmul.f32 %v1868_v11, %v2176_v22 }
 0xa07   :  { %v1474_v26 = vmul.f32 %v1473_v13, %v1371_v12 }
 0xa09   :  { %v1475_v27 = vadd.f32 %v1474_v26, %v1472_v25 }
 0xa0b   :  { %v1476_v28 = vmul.f32 %v1475_v27, %v1044_v24 }
 0xa0d   :  { %v1477_v29 = vadd.f32 %v1476_v28, %v2180_v23 }
 0xa0f   :  { %1553 = vst.msk [vmem:[#allocation2] sm:$0xff] %vm25_vm0, %v1477_v29 }
 0xab8   :  { %v1547_v31 = vpop.f32.mrf.mxu1 }
 0xab9   :  { %v1551_v61 = vmul.f32 %v1547_v31, %v1044_v24 }
 0xaba   :  { %v1845_v32 = vpop.f32.mrf.mxu1 }
 0xabb   :  { %v1552_v33 = vadd.f32 %v1551_v61, %v2209_v30 }
 0xabd   :  { %1555 = vrot.lane.b32.xlu0 %v1552_v33, %s1894_s0 }
 0xb2f   :  { %v1556_v21 = vpop.permute.xlu0 %1555 }
 0xb30   :  { %1559 = vst.msk [vmem:[#allocation2] sm:$0xff] %vm1558_vm6, %v1556_v21 }
 0xb31   :  { %1880 = shalt.err (!%p1877_p4)
}
 0xb32   :  { %1569 = dma.vmem_to_hbm [thread:$0]  %s1567_s11, 128, %s2293_s3, [#allocation3]  }
 0xb33   :  { %1889 = dma.done.wait [#allocation3], 128  }
 0xb34   :  { %1890 = vsyncadd [#allocation3], 4294967168 }
 0xb35   :  { %1573 = vsyncpa [#allocation3], 1 }

</bundles_post_ra>
